<compile_context>
chip_gen: v7x
topology: tpu7x:2x2x1
jax: 0.10.0
libtpu: 0.0.40
codegen_flags: <defaults>
</compile_context>

<pallas_src>
from functools import partial

import jax
import jax.numpy as jnp
from jax import lax
from jax.experimental import pallas as pl
from jax.experimental.pallas import tpu as pltpu


def _mlp_i_kernel(x_ref, w1_ref, b1_ref, w2_ref, b2_ref, out_ref, *,
                  chunk, d_out, compute_dtype):
    # x_ref : (tile, D_in)        f32  (cast to compute dtype in-body, per chunk)
    # w1_ref: (D_in, 2H)          bf16 fused [w1_mean | w1_std]
    # b1_ref: (1, 2H)             f32
    # w2_ref: (2H, 2*D_out)       bf16 block-diag [[w2_mean, 0], [0, w2_std]]
    # b2_ref: (1, 2*D_out)        f32
    # out_ref:(tile, 2*D_out)     out dtype, columns [mean | std]
    w1 = w1_ref[...]
    b1 = b1_ref[...]
    w2 = w2_ref[...]
    b2 = b2_ref[...]

    tile = x_ref.shape[0]
    n_chunks = tile // chunk
    width = out_ref.shape[-1]

    # Hoisted loop-invariant column mask (std half of the fused slab).
    col = lax.broadcasted_iota(jnp.int32, (chunk, width), 1)
    is_std = col >= d_out

    def body(c, carry):
        r = pl.multiple_of(c * chunk, chunk)

        # In-kernel f32 -> bf16 cast of the input strip (VPU has slack here).
        xc = x_ref[pl.ds(r, chunk), :].astype(compute_dtype)

        # Fused layer 1: single MXU pass over both branches (N = 2H), f32 accum.
        h = jnp.dot(xc, w1, preferred_element_type=jnp.float32) + b1
        h = jnp.maximum(h, 0.0).astype(compute_dtype)

        # Fused layer 2: block-diagonal MXU pass -> lane-fused [mean | std] strip.
        z = jnp.dot(h, w2, preferred_element_type=jnp.float32) + b2

        # Softplus (PyTorch default beta=1, threshold=20) on the std half only.
        sp = jnp.where(z > 20.0, z, jnp.log1p(jnp.exp(jnp.minimum(z, 20.0))))
        out = jnp.where(is_std, sp, z)

        out_ref[pl.ds(r, chunk), :] = out.astype(out_ref.dtype)
        return carry

    lax.fori_loop(0, n_chunks, body, 0, unroll=True)


def _round_up(a, m):
    return ((a + m - 1) // m) * m


def starting_mlp_i(x, params, *, tile_b=2048, chunk_b=128,
                   compute_dtype=jnp.bfloat16, out_dtype=jnp.bfloat16):
    """Forward pass of Starting_MLP_I. Returns (mean, std)."""
    (w1m, b1m, w2m, b2m, w1s, b1s, w2s, b2s) = params
    B, D_in = x.shape
    H = w1m.shape[1]
    D_out = w2m.shape[1]
    W = 2 * D_out

    # --- fuse the two branches (done once in the wrapper, outside the grid loop) ---
    w1 = jnp.concatenate([w1m, w1s], axis=1).astype(compute_dtype)            # (D_in, 2H)
    b1 = jnp.concatenate([b1m, b1s], axis=1).astype(jnp.float32)              # (1, 2H)
    zero = jnp.zeros((H, D_out), jnp.float32)
    w2 = jnp.concatenate(
        [jnp.concatenate([w2m, zero], axis=1),
         jnp.concatenate([zero, w2s], axis=1)], axis=0).astype(compute_dtype)  # (2H, 2*D_out)
    b2 = jnp.concatenate([b2m, b2s], axis=1).astype(jnp.float32)              # (1, 2*D_out)

    # --- tiling: in-kernel strip (chunk) and grid block (tile); NO input padding ---
    chunk = max(8, (min(chunk_b, _round_up(B, 8)) // 8) * 8)      # sublane-aligned strip
    n_steps = pl.cdiv(B, tile_b)
    if n_steps == 1 and B > chunk:
        n_steps = 2                                               # >=2 steps -> both v7x TCs work
    tile = max(chunk, _round_up(pl.cdiv(B, n_steps), chunk))      # balanced, multiple of chunk
    grid = (pl.cdiv(B, tile),)
    B_pad = grid[0] * tile                                        # only the OUTPUT is over-allocated

    full = lambda i: (0, 0)

    out = pl.pallas_call(
        partial(_mlp_i_kernel, chunk=chunk, d_out=D_out, compute_dtype=compute_dtype),
        out_shape=jax.ShapeDtypeStruct((B_pad, W), out_dtype),
        grid_spec=pltpu.PrefetchScalarGridSpec(
            num_scalar_prefetch=0,
            grid=grid,
            in_specs=[
                pl.BlockSpec((tile, D_in), lambda i: (i, 0)),     # x tile (f32, ragged tail OK)
                pl.BlockSpec((D_in, 2 * H), full),                # fused W1 (VMEM-resident)
                pl.BlockSpec((1, 2 * H), full),                   # fused b1
                pl.BlockSpec((2 * H, W), full),                   # fused block-diag W2
                pl.BlockSpec((1, W), full),                       # fused b2
            ],
            out_specs=pl.BlockSpec((tile, W), lambda i: (i, 0)),
        ),
        compiler_params=pltpu.CompilerParams(
            dimension_semantics=("parallel",),                    # batch axis shards across TCs
            vmem_limit_bytes=32 * 1024 * 1024,
        ),
    )(x, w1, b1, w2, b2)                                          # x stays f32; cast in-kernel

    out = out[:B]
    mean = out[:, :D_out]
    std = out[:, D_out:]
    return mean, std


def init_params(key, input_size, output_size, hidden=128):
    """Deterministic init mimicking nn.Linear (uniform +/- 1/sqrt(fan_in))."""
    ks = jax.random.split(key, 8)

    def lin(kw, kb, fan_in, fan_out):
        bound = 1.0 / jnp.sqrt(fan_in)
        w = jax.random.uniform(kw, (fan_in, fan_out), jnp.float32, -bound, bound)
        b = jax.random.uniform(kb, (1, fan_out), jnp.float32, -bound, bound)
        return w, b

    w1m, b1m = lin(ks[0], ks[1], input_size, hidden)
    w2m, b2m = lin(ks[2], ks[3], hidden, output_size)
    w1s, b1s = lin(ks[4], ks[5], input_size, hidden)
    w2s, b2s = lin(ks[6], ks[7], hidden, output_size)
    return (w1m, b1m, w2m, b2m, w1s, b1s, w2s, b2s)


def reference_f32(x, params):
    """Pure-f32 reference (exact module semantics)."""
    (w1m, b1m, w2m, b2m, w1s, b1s, w2s, b2s) = params
    hm = jnp.maximum(x @ w1m + b1m, 0.0)
    mean = hm @ w2m + b2m
    hs = jnp.maximum(x @ w1s + b1s, 0.0)
    z = hs @ w2s + b2s
    std = jnp.where(z > 20.0, z, jnp.log1p(jnp.exp(jnp.minimum(z, 20.0))))
    return mean, std


def reference_bf16(x, params, compute_dtype=jnp.bfloat16):
    """Reference with the same bf16 quantization / f32 accumulation as the kernel."""
    (w1m, b1m, w2m, b2m, w1s, b1s, w2s, b2s) = params
    xc = x.astype(compute_dtype)

    def branch(w1, b1, w2, b2):
        h = jnp.dot(xc, w1.astype(compute_dtype),
                    preferred_element_type=jnp.float32) + b1
        h = jnp.maximum(h, 0.0).astype(compute_dtype)
        return jnp.dot(h, w2.astype(compute_dtype),
                       preferred_element_type=jnp.float32) + b2

    mean = branch(w1m, b1m, w2m, b2m)
    z = branch(w1s, b1s, w2s, b2s)
    std = jnp.where(z > 20.0, z, jnp.log1p(jnp.exp(jnp.minimum(z, 20.0))))
    return mean, std


if __name__ == "__main__":
    # Small shapes consistent with the module; B deliberately not a multiple of the
    # chunk/tile size to exercise the ragged (un-padded) last block path.
    B, D_in, D_out = 100, 32, 16
    key = jax.random.PRNGKey(0)
    kx, kp = jax.random.split(key)
    x = jax.random.normal(kx, (B, D_in), jnp.float32)
    params = init_params(kp, D_in, D_out)

    # Default path: bf16 fused [mean|std] slab (halved HBM write stream).
    mean, std = starting_mlp_i(x, params)
    jax.block_until_ready((mean, std))
    assert mean.shape == (B, D_out) and std.shape == (B, D_out)

    mean_f32, std_f32 = reference_f32(x, params)
    assert jnp.allclose(mean.astype(jnp.float32), mean_f32, atol=5e-2, rtol=5e-2), "mean vs f32 ref"
    assert jnp.allclose(std.astype(jnp.float32), std_f32, atol=5e-2, rtol=5e-2), "std vs f32 ref"

    # f32-output path, checked against a reference with identical bf16 quantization.
    mean32, std32 = starting_mlp_i(x, params, out_dtype=jnp.float32)
    jax.block_until_ready((mean32, std32))
    mean_b, std_b = reference_bf16(x, params)
    assert jnp.allclose(mean32, mean_b, atol=2e-3, rtol=2e-3), "mean vs bf16 reference"
    assert jnp.allclose(std32, std_b, atol=2e-3, rtol=2e-3), "std vs bf16 reference"

    assert bool(jnp.all(std32 > 0.0))

    print("KERNEL_OK")
</pallas_src>

<mosaic_0001>
module attributes {stable_mosaic.version = 11 : i64} {
  func.func @_mlp_i_kernel(%arg0: i32, %arg1: memref<104x32xf32, #tpu.memory_space<vmem>>, %arg2: memref<32x256xbf16, #tpu.memory_space<vmem>>, %arg3: memref<1x256xf32, #tpu.memory_space<vmem>>, %arg4: memref<256x32xbf16, #tpu.memory_space<vmem>>, %arg5: memref<1x32xf32, #tpu.memory_space<vmem>>, %arg6: memref<104x32xbf16, #tpu.memory_space<vmem>>) attributes {dimension_semantics = [#tpu.dimension_semantics<parallel>], iteration_bounds = array<i64: 1>, scalar_prefetch = 0 : i64, scratch_operands = 0 : i64, tpu.core_type = #tpu.core_type<tc>, window_params = [{transform_indices = @transform_0, window_bounds = array<i64: 104, 32>}, {pipeline_mode = #tpu.pipeline_mode<synchronous>, transform_indices = @transform_1, window_bounds = array<i64: 32, 256>}, {pipeline_mode = #tpu.pipeline_mode<synchronous>, transform_indices = @transform_2, window_bounds = array<i64: 1, 256>}, {pipeline_mode = #tpu.pipeline_mode<synchronous>, transform_indices = @transform_3, window_bounds = array<i64: 256, 32>}, {pipeline_mode = #tpu.pipeline_mode<synchronous>, transform_indices = @transform_4, window_bounds = array<i64: 1, 32>}, {transform_indices = @transform_5, window_bounds = array<i64: 104, 32>}]} {
    %c0 = arith.constant 0 : index
    %c0_0 = arith.constant 0 : index
    %0 = vector.load %arg2[%c0, %c0_0] : memref<32x256xbf16, #tpu.memory_space<vmem>>, vector<32x256xbf16>
    %c0_1 = arith.constant 0 : index
    %c0_2 = arith.constant 0 : index
    %1 = vector.load %arg3[%c0_1, %c0_2] : memref<1x256xf32, #tpu.memory_space<vmem>>, vector<1x256xf32>
    %c0_3 = arith.constant 0 : index
    %c0_4 = arith.constant 0 : index
    %2 = vector.load %arg4[%c0_3, %c0_4] : memref<256x32xbf16, #tpu.memory_space<vmem>>, vector<256x32xbf16>
    %c0_5 = arith.constant 0 : index
    %c0_6 = arith.constant 0 : index
    %3 = vector.load %arg5[%c0_5, %c0_6] : memref<1x32xf32, #tpu.memory_space<vmem>>, vector<1x32xf32>
    %4 = tpu.iota {dimensions = array<i32: 1>} : vector<104x32xi32>
    %c16_i32 = arith.constant 16 : i32
    %5 = vector.broadcast %c16_i32 : i32 to vector<104x32xi32>
    %6 = arith.cmpi sge, %4, %5 : vector<104x32xi32>
    %c0_i32 = arith.constant 0 : i32
    %c104_i32 = arith.constant 104 : i32
    %7 = arith.muli %c0_i32, %c104_i32 : i32
    %8 = tpu.assume_multiple %7, 104 : i32
    %9 = arith.index_cast %8 : i32 to index
    %c0_7 = arith.constant 0 : index
    %10 = vector.load %arg1[%9, %c0_7] : memref<104x32xf32, #tpu.memory_space<vmem>>, vector<104x32xf32>
    %11 = arith.truncf %10 : vector<104x32xf32> to vector<104x32xbf16>
    %cst = arith.constant dense<0.000000e+00> : vector<104x256xf32>
    %12 = tpu.matmul %11, %0, %cst {dimension_numbers = #tpu.dot_dimension_numbers<[1], [0], [0], [1], [0, 0, 1, 1], [], []>} : vector<104x32xbf16>, vector<32x256xbf16>, vector<104x256xf32> -> vector<104x256xf32>
    %13 = vector.broadcast %1 : vector<1x256xf32> to vector<104x256xf32>
    %14 = arith.addf %12, %13 : vector<104x256xf32>
    %cst_8 = arith.constant 0.000000e+00 : f32
    %15 = vector.broadcast %cst_8 : f32 to vector<104x256xf32>
    %16 = arith.maximumf %14, %15 : vector<104x256xf32>
    %17 = arith.truncf %16 : vector<104x256xf32> to vector<104x256xbf16>
    %cst_9 = arith.constant dense<0.000000e+00> : vector<104x32xf32>
    %18 = tpu.matmul %17, %2, %cst_9 {dimension_numbers = #tpu.dot_dimension_numbers<[1], [0], [0], [1], [0, 0, 1, 1], [], []>} : vector<104x256xbf16>, vector<256x32xbf16>, vector<104x32xf32> -> vector<104x32xf32>
    %19 = vector.broadcast %3 : vector<1x32xf32> to vector<104x32xf32>
    %20 = arith.addf %18, %19 : vector<104x32xf32>
    %cst_10 = arith.constant 2.000000e+01 : f32
    %21 = vector.broadcast %cst_10 : f32 to vector<104x32xf32>
    %22 = arith.cmpf ogt, %20, %21 : vector<104x32xf32>
    %cst_11 = arith.constant 2.000000e+01 : f32
    %23 = vector.broadcast %cst_11 : f32 to vector<104x32xf32>
    %24 = arith.minimumf %20, %23 : vector<104x32xf32>
    %25 = math.exp %24 : vector<104x32xf32>
    %26 = math.log1p %25 : vector<104x32xf32>
    %27 = arith.select %22, %20, %26 : vector<104x32xi1>, vector<104x32xf32>
    %28 = arith.select %6, %27, %20 : vector<104x32xi1>, vector<104x32xf32>
    %29 = arith.truncf %28 : vector<104x32xf32> to vector<104x32xbf16>
    %30 = arith.index_cast %8 : i32 to index
    %c0_12 = arith.constant 0 : index
    %31 = vector.load %arg6[%30, %c0_12] : memref<104x32xbf16, #tpu.memory_space<vmem>>, vector<104x32xbf16>
    tpu.vector_store %arg6[%30, %c0_12], %29 {strides = array<i32>} : memref<104x32xbf16, #tpu.memory_space<vmem>>, vector<104x32xbf16>,
    %c1_i32 = arith.constant 1 : i32
    return
  }
  func.func @transform_0(%arg0: i32) -> (i32, i32) {
    %c0_i32 = arith.constant 0 : i32
    %c0_i32_0 = arith.constant 0 : i32
    return %arg0, %c0_i32 : i32, i32
  }
  func.func @transform_1(%arg0: i32) -> (i32, i32) {
    %c0_i32 = arith.constant 0 : i32
    %c0_i32_0 = arith.constant 0 : i32
    %c0_i32_1 = arith.constant 0 : i32
    return %c0_i32, %c0_i32_0 : i32, i32
  }
  func.func @transform_2(%arg0: i32) -> (i32, i32) {
    %c0_i32 = arith.constant 0 : i32
    %c0_i32_0 = arith.constant 0 : i32
    %c0_i32_1 = arith.constant 0 : i32
    return %c0_i32, %c0_i32_0 : i32, i32
  }
  func.func @transform_3(%arg0: i32) -> (i32, i32) {
    %c0_i32 = arith.constant 0 : i32
    %c0_i32_0 = arith.constant 0 : i32
    %c0_i32_1 = arith.constant 0 : i32
    return %c0_i32, %c0_i32_0 : i32, i32
  }
  func.func @transform_4(%arg0: i32) -> (i32, i32) {
    %c0_i32 = arith.constant 0 : i32
    %c0_i32_0 = arith.constant 0 : i32
    %c0_i32_1 = arith.constant 0 : i32
    return %c0_i32, %c0_i32_0 : i32, i32
  }
  func.func @transform_5(%arg0: i32) -> (i32, i32) {
    %c0_i32 = arith.constant 0 : i32
    %c0_i32_0 = arith.constant 0 : i32
    return %arg0, %c0_i32 : i32, i32
  }
}

</mosaic_0001>

<bundles_post_ra>
// kernel: tpu_custom_call.1
= control target key start
LH: loop header
LB: loop body
LE: loop exit
PB: predicated region body
PF: predicated region fallthrough
CT: control target
= control target key end

     0   :  { %v935_v1 = vmov 0   ;;  %vm113_vm0 = vcmask 261120   ;;  %v59_v41 = vlaneseq  ;;  %vm714_vm2 = vcmask 257024   ;;  %s1351_s1 = inlined_call_operand.vmem [shape: bf16[32,256], index: 1, kind: input, shape index: {}]   ;;  %s1352_s0 = inlined_call_operand.vmem [shape: f32[100,32], index: 0, kind: input, shape index: {}]   ;;  %s1353_s3 = inlined_call_operand.vmem [shape: bf16[256,32], index: 3, kind: input, shape index: {}]   ;;  %s1354_s2 = inlined_call_operand.vmem [shape: f32[1,256], index: 2, kind: input, shape index: {}]   ;;  %s1355_s4 = inlined_call_operand.vmem [shape: f32[1,32], index: 4, kind: input, shape index: {}]   ;;  %s1356_s5 = inlined_call_operand.vmem [shape: bf16[104,32], index: 5, kind: output, shape index: {}]  }
   0x1   :  { %v861_v0 = vld [vmem:[%s1351_s1 + $0x4] ss:$8 sps:$4 sm:$0xff]   ;;  %167 = vmatprep.mubr.bf16.mxu0 %v935_v1  ;;  %v863_v2 = vld [vmem:[%s1351_s1] ss:$8 sps:$4 sm:$0xff]   ;;  %v864_v3 = vld [vmem:[%s1351_s1 + $0x14] ss:$8 sps:$4 sm:$0xff]  }
   0x2   :  { %135 = vmatprep.subr.bf16.mxu0 %v861_v0  ;;  %v866_v4 = vld [vmem:[%s1351_s1 + $0x10] ss:$8 sps:$4 sm:$0xff]   ;;  %v62_v5 = vld [vmem:[%s1352_s0] sm:$0xff]  ;;  %v63_v6 = vld [vmem:[%s1352_s0 + $0x8] sm:$0xff]  ;;  %v84_v42 = vshrl.u32 %v59_v41, 7 }
   0x3   :  { %136 = vmatpush1.bf16.msra.mxu0 %v863_v2  ;;  %v75_v7 = vpack.c.bf16 %v63_v6, %v62_v5  ;;  %v867_v8 = vld [vmem:[%s1353_s3 + $0x40] sm:$0xff]   ;;  %v64_v10 = vld [vmem:[%s1352_s0 + $0x10] sm:$0xff]  ;;  %v869_v11 = vld [vmem:[%s1353_s3 + $0x48] sm:$0xff]  }
   0x4   :  { %137 = vmatprep.subr.bf16.mxu0 %v864_v3  ;;  %v868_v9 = vld [vmem:[%s1353_s3] sm:$0xff]   ;;  %844 = vmatprep.subr.bf16.mxu1 %v867_v8  ;;  %v65_v12 = vld [vmem:[%s1352_s0 + $0x18] sm:$0xff]  ;;  %v870_v13 = vld [vmem:[%s1353_s3 + $0x8] sm:$0xff]   ;;  %v85_v43 = vsub.s32 0, %v84_v42  ;;  %v89_v45 = vsub.s32 1, %v84_v42 }
   0x5   :  { %852 = vmatpush3.bf16.msra.mxu1 %v868_v9  ;;  %v871_v14 = vld [vmem:[%s1353_s3 + $0x50] sm:$0xff]   ;;  %v76_v15 = vpack.c.bf16 %v65_v12, %v64_v10  ;;  %v873_v17 = vld [vmem:[%s1353_s3 + $0x58] sm:$0xff]   ;;  %v66_v18 = vld [vmem:[%s1352_s0 + $0x20] sm:$0xff] }
   0x6   :  { %845 = vmatprep.subr.bf16.mxu1 %v869_v11  ;;  %v872_v16 = vld [vmem:[%s1353_s3 + $0x10] sm:$0xff]   ;;  %v67_v19 = vld [vmem:[%s1352_s0 + $0x28] sm:$0xff]  ;;  %v874_v20 = vld [vmem:[%s1353_s3 + $0x18] sm:$0xff]  }
   0x7   :  { %138 = vmatpush1.bf16.msra.mxu0 %v866_v4  ;;  %v875_v21 = vld [vmem:[%s1353_s3 + $0x60] sm:$0xff]   ;;  %v77_v22 = vpack.c.bf16 %v67_v19, %v66_v18  ;;  %v877_v24 = vld [vmem:[%s1353_s3 + $0x68] sm:$0xff]   ;;  %v68_v25 = vld [vmem:[%s1352_s0 + $0x30] sm:$0xff] }
   0x8   :  { %786 = vmatprep.subr.bf16.mxu0 %v867_v8  ;;  %v876_v23 = vld [vmem:[%s1353_s3 + $0x20] sm:$0xff]   ;;  %v69_v26 = vld [vmem:[%s1352_s0 + $0x38] sm:$0xff]  ;;  %v71_v29 = vld [vmem:[%s1352_s0 + $0x48] sm:$0xff] }
   0x9   :  { %853 = vmatpush3.bf16.msra.mxu1 %v870_v13  ;;  %v78_v27 = vpack.c.bf16 %v69_v26, %v68_v25  ;;  %v70_v28 = vld [vmem:[%s1352_s0 + $0x40] sm:$0xff]  ;;  %v72_v31 = vld [vmem:[%s1352_s0 + $0x50] sm:$0xff]  ;;  %v73_v32 = vld [vmem:[%s1352_s0 + $0x58] sm:$0xff] }
   0xa   :  { %736 = vmatmul.mubr.msk.bf16.vlgmr.msra.gmra.mrb[0].mxu0 %vm113_vm0, %v75_v7  ;;  %846 = vmatprep.subr.bf16.mxu1 %v871_v14  ;;  %v79_v30 = vpack.c.bf16 %v71_v29, %v70_v28  ;;  %v80_v33 = vpack.c.bf16 %v73_v32, %v72_v31  ;;  %v74_v34 = vld [vmem:[%s1352_s0 + $0x60] sm:$0xff]  ;;  %v878_v36 = vld [vmem:[%s1353_s3 + $0x28] sm:$0xff]   ;;  %v879_v37 = vld [vmem:[%s1353_s3 + $0x70] sm:$0xff]  }
   0xb   :  { %177 = vmatprep.mubr.bf16.mxu0 %v935_v1  ;;  %787 = vmatpush3.bf16.msra.mxu0 %v868_v9  ;;  %v81_v35 = vpack.c.bf16 %v74_v34, %v74_v34  ;;  %v880_v38 = vld [vmem:[%s1353_s3 + $0x30] sm:$0xff]   ;;  %v881_v39 = vld [vmem:[%s1353_s3 + $0x78] sm:$0xff]   ;;  %v25_v44 = vld [vmem:[%s1354_s2] sm:$0x3] }
   0xc   :  { %788 = vmatprep.subr.bf16.mxu0 %v869_v11  ;;  %v882_v40 = vld [vmem:[%s1353_s3 + $0x38] sm:$0xff]   ;;  %v1083_v46 = vrot.slane %v25_v44, %v85_v43  ;;  %v1085_v47 = vrot.slane %v25_v44, %v89_v45 }
   0xd   :  { %854 = vmatpush3.bf16.msra.mxu1 %v872_v16 }
   0xe   :  { %847 = vmatprep.subr.bf16.mxu1 %v873_v17 }
   0xf   :  { %789 = vmatpush3.bf16.msra.mxu0 %v870_v13 }
  0x10   :  { %790 = vmatprep.subr.bf16.mxu0 %v871_v14 }
  0x11   :  { %855 = vmatpush3.bf16.msra.mxu1 %v874_v20 }
  0x12   :  { %737 = vmatmul.mubr.msk.bf16.gmra.mrb[4].mxu0 %vm113_vm0, %v76_v15  ;;  %848 = vmatprep.subr.bf16.mxu1 %v875_v21 }
  0x13   :  { %187 = vmatprep.mubr.bf16.mxu0 %v935_v1  ;;  %791 = vmatpush3.bf16.msra.mxu0 %v872_v16 }
  0x14   :  { %792 = vmatprep.subr.bf16.mxu0 %v873_v17 }
  0x15   :  { %856 = vmatpush3.bf16.msra.mxu1 %v876_v23 }
  0x16   :  { %849 = vmatprep.subr.bf16.mxu1 %v877_v24 }
  0x17   :  { %793 = vmatpush3.bf16.msra.mxu0 %v874_v20 }
  0x18   :  { %794 = vmatprep.subr.bf16.mxu0 %v875_v21 }
  0x19   :  { %857 = vmatpush3.bf16.msra.mxu1 %v878_v36 }
  0x1a   :  { %738 = vmatmul.mubr.msk.bf16.gmra.mrb[8].mxu0 %vm113_vm0, %v77_v22  ;;  %850 = vmatprep.subr.bf16.mxu1 %v879_v37 }
  0x1b   :  { %197 = vmatprep.mubr.bf16.mxu0 %v935_v1  ;;  %795 = vmatpush3.bf16.msra.mxu0 %v876_v23 }
  0x1c   :  { %796 = vmatprep.subr.bf16.mxu0 %v877_v24 }
  0x1d   :  { %858 = vmatpush3.bf16.msra.mxu1 %v880_v38 }
  0x1e   :  { %851 = vmatprep.subr.bf16.mxu1 %v881_v39 }
  0x1f   :  { %797 = vmatpush3.bf16.msra.mxu0 %v878_v36 }
  0x20   :  { %798 = vmatprep.subr.bf16.mxu0 %v879_v37 }
  0x21   :  { %859 = vmatpush3.bf16.msra.mxu1 %v882_v40 }
  0x22   :  { %739 = vmatmul.mubr.msk.bf16.gmra.mrb[12].mxu0 %vm113_vm0, %v78_v27 }
  0x23   :  { %207 = vmatprep.mubr.bf16.mxu0 %v935_v1  ;;  %799 = vmatpush3.bf16.msra.mxu0 %v880_v38 }
  0x24   :  { %800 = vmatprep.subr.bf16.mxu0 %v881_v39 }
  0x27   :  { %801 = vmatpush3.bf16.msra.mxu0 %v882_v40 }
  0x2a   :  { %740 = vmatmul.mubr.msk.bf16.gmra.mrb[16].mxu0 %vm113_vm0, %v79_v30 }
  0x2b   :  { %217 = vmatprep.mubr.bf16.mxu0 %v935_v1 }
  0x32   :  { %741 = vmatmul.mubr.msk.bf16.gmra.mrb[20].mxu0 %vm113_vm0, %v80_v33 }
  0x33   :  { %227 = vmatprep.mubr.bf16.mxu0 %v935_v1 }
  0x3a   :  { %742 = vmatmul.mubr.msk.bf16.gmra.mrb[24].mxu0 %vm113_vm0, %v81_v35 }
  0xdd   :  { %v169_v48 = vpop.f32.mrb[0].mxu0 }
  0xde   :  { %v170_v49 = vadd.f32 %v169_v48, %v1083_v46  ;;  %v171_v50 = vpop.f32.mrb[1].mxu0 }
  0xdf   :  { %v172_v51 = vadd.f32 %v171_v50, %v1085_v47  ;;  %v173_v52 = vpop.f32.mrb[2].mxu0 }
  0xe0   :  { %v174_v53 = vadd.f32 %v173_v52, %v1083_v46  ;;  %v175_v54 = vpop.f32.mrb[3].mxu0  ;;  %v236_v56 = vmax.f32 %v170_v49, 0.0 }
  0xe1   :  { %v176_v55 = vadd.f32 %v175_v54, %v1085_v47  ;;  %v237_v58 = vmax.f32 %v172_v51, 0.0 }
  0xe2   :  { %v238_v57 = vmax.f32 %v174_v53, 0.0 }
  0xe3   :  { %v239_v59 = vmax.f32 %v176_v55, 0.0 }
  0xe4   :  { %v262_v60 = vpack.c.bf16 %v238_v57, %v236_v56 }
  0xe5   :  { %v263_v61 = vpack.c.bf16 %v239_v59, %v237_v58  ;;  %v179_v62 = vpop.f32.mrb[4].mxu0 }
  0xe6   :  { %v180_v63 = vadd.f32 %v179_v62, %v1083_v46  ;;  %v181_v0 = vpop.f32.mrb[5].mxu0 }
  0xe7   :  { %v182_v1 = vadd.f32 %v181_v0, %v1085_v47  ;;  %v183_v2 = vpop.f32.mrb[6].mxu0  ;;  %410 = vmatprep.mubr.bf16.mxu0 %v263_v61 }
  0xe8   :  { %v184_v3 = vadd.f32 %v183_v2, %v1083_v46  ;;  %v185_v4 = vpop.f32.mrb[7].mxu0  ;;  %411 = vmatmul.mubr.bf16.vlgmr.msra.gmra.mrb[28].mxu0 %v262_v60  ;;  %v240_v6 = vmax.f32 %v180_v63, 0.0 }
  0xe9   :  { %v186_v5 = vadd.f32 %v185_v4, %v1085_v47  ;;  %v241_v8 = vmax.f32 %v182_v1, 0.0 }
  0xea   :  { %v242_v7 = vmax.f32 %v184_v3, 0.0 }
  0xeb   :  { %v243_v9 = vmax.f32 %v186_v5, 0.0 }
  0xec   :  { %v264_v10 = vpack.c.bf16 %v242_v7, %v240_v6 }
  0xed   :  { %v189_v11 = vpop.f32.mrb[8].mxu0  ;;  %v265_v12 = vpack.c.bf16 %v243_v9, %v241_v8 }
  0xee   :  { %v190_v13 = vadd.f32 %v189_v11, %v1083_v46  ;;  %v191_v14 = vpop.f32.mrb[9].mxu0 }
  0xef   :  { %v192_v15 = vadd.f32 %v191_v14, %v1085_v47  ;;  %v193_v16 = vpop.f32.mrb[10].mxu0  ;;  %418 = vmatprep.mubr.bf16.mxu1 %v265_v12 }
  0xf0   :  { %v194_v17 = vadd.f32 %v193_v16, %v1083_v46  ;;  %v195_v18 = vpop.f32.mrb[11].mxu0  ;;  %419 = vmatmul.mubr.bf16.vlgmr.msra.gmra.mrb[0].mxu1 %v264_v10  ;;  %v244_v20 = vmax.f32 %v190_v13, 0.0 }
  0xf1   :  { %v196_v19 = vadd.f32 %v195_v18, %v1085_v47  ;;  %v245_v22 = vmax.f32 %v192_v15, 0.0  ;;  %v1116_v18 = vld [vmem:[%s1355_s4] ss:$0 sm:$0xff] }
  0xf2   :  { %v246_v21 = vmax.f32 %v194_v17, 0.0 }
  0xf3   :  { %v247_v23 = vmax.f32 %v196_v19, 0.0 }
  0xf4   :  { %v266_v24 = vpack.c.bf16 %v246_v21, %v244_v20 }
  0xf5   :  { %v267_v25 = vpack.c.bf16 %v247_v23, %v245_v22  ;;  %v199_v26 = vpop.f32.mrb[12].mxu0 }
  0xf6   :  { %v200_v27 = vadd.f32 %v199_v26, %v1083_v46  ;;  %v201_v28 = vpop.f32.mrb[13].mxu0 }
  0xf7   :  { %v202_v29 = vadd.f32 %v201_v28, %v1085_v47  ;;  %v203_v30 = vpop.f32.mrb[14].mxu0  ;;  %426 = vmatprep.mubr.bf16.mxu1 %v267_v25 }
  0xf8   :  { %v204_v31 = vadd.f32 %v203_v30, %v1083_v46  ;;  %v205_v32 = vpop.f32.mrb[15].mxu0  ;;  %427 = vmatmul.mubr.bf16.gmra.mrb[4].mxu1 %v266_v24  ;;  %v248_v34 = vmax.f32 %v200_v27, 0.0 }
  0xf9   :  { %v206_v33 = vadd.f32 %v205_v32, %v1085_v47  ;;  %v249_v36 = vmax.f32 %v202_v29, 0.0 }
  0xfa   :  { %v250_v35 = vmax.f32 %v204_v31, 0.0 }
  0xfb   :  { %v251_v37 = vmax.f32 %v206_v33, 0.0 }
  0xfc   :  { %v268_v38 = vpack.c.bf16 %v250_v35, %v248_v34 }
  0xfd   :  { %v269_v39 = vpack.c.bf16 %v251_v37, %v249_v36  ;;  %v209_v40 = vpop.f32.mrb[16].mxu0 }
  0xfe   :  { %v210_v42 = vadd.f32 %v209_v40, %v1083_v46  ;;  %v211_v43 = vpop.f32.mrb[17].mxu0 }
  0xff   :  { %v212_v44 = vadd.f32 %v211_v43, %v1085_v47  ;;  %v213_v45 = vpop.f32.mrb[18].mxu0  ;;  %434 = vmatprep.mubr.bf16.mxu1 %v269_v39 }
 0x100   :  { %v214_v48 = vadd.f32 %v213_v45, %v1083_v46  ;;  %v215_v49 = vpop.f32.mrb[19].mxu0  ;;  %435 = vmatmul.mubr.bf16.gmra.mrb[8].mxu1 %v268_v38  ;;  %v252_v51 = vmax.f32 %v210_v42, 0.0 }
 0x101   :  { %v216_v50 = vadd.f32 %v215_v49, %v1085_v47  ;;  %v253_v53 = vmax.f32 %v212_v44, 0.0 }
 0x102   :  { %v254_v52 = vmax.f32 %v214_v48, 0.0 }
 0x103   :  { %v255_v54 = vmax.f32 %v216_v50, 0.0 }
 0x104   :  { %v270_v55 = vpack.c.bf16 %v254_v52, %v252_v51 }
 0x105   :  { %v271_v56 = vpack.c.bf16 %v255_v54, %v253_v53  ;;  %v219_v57 = vpop.f32.mrb[20].mxu0 }
 0x106   :  { %v220_v58 = vadd.f32 %v219_v57, %v1083_v46  ;;  %v221_v59 = vpop.f32.mrb[21].mxu0  ;;  %v1142_v57 = vand.u32 127, %v59_v41 }
 0x107   :  { %v222_v60 = vadd.f32 %v221_v59, %v1085_v47  ;;  %v223_v61 = vpop.f32.mrb[22].mxu0  ;;  %442 = vmatprep.mubr.bf16.mxu1 %v271_v56 }
 0x108   :  { %v224_v62 = vadd.f32 %v223_v61, %v1083_v46  ;;  %v225_v63 = vpop.f32.mrb[23].mxu0  ;;  %443 = vmatmul.mubr.bf16.gmra.mrb[12].mxu1 %v270_v55  ;;  %v256_v1 = vmax.f32 %v220_v58, 0.0  ;;  %vm61_vm1 = vcmp.ge.s32.totalorder %v1142_v57, 16 }
 0x109   :  { %v226_v0 = vadd.f32 %v225_v63, %v1085_v47  ;;  %v257_v3 = vmax.f32 %v222_v60, 0.0 }
 0x10a   :  { %v258_v2 = vmax.f32 %v224_v62, 0.0 }
 0x10b   :  { %v259_v4 = vmax.f32 %v226_v0, 0.0 }
 0x10c   :  { %v272_v5 = vpack.c.bf16 %v258_v2, %v256_v1 }
 0x10d   :  { %v273_v6 = vpack.c.bf16 %v259_v4, %v257_v3  ;;  %v229_v7 = vpop.f32.mrb[24].mxu0 }
 0x10e   :  { %v230_v8 = vadd.f32 %v229_v7, %v1083_v46  ;;  %v231_v9 = vpop.f32.mrb[25].mxu0 }
 0x10f   :  { %v232_v10 = vadd.f32 %v231_v9, %v1085_v47  ;;  %v233_v11 = vpop.f32.mrb[26].mxu0  ;;  %450 = vmatprep.mubr.bf16.mxu1 %v273_v6 }
 0x110   :  { %v234_v12 = vpop.f32.mrb[27].mxu0  ;;  %451 = vmatmul.mubr.bf16.gmra.mrb[16].mxu1 %v272_v5  ;;  %v260_v14 = vmax.f32 %v230_v8, 0.0 }
 0x111   :  { %v261_v13 = vmax.f32 %v232_v10, 0.0 }
 0x112   :  { %v274_v16 = vpack.c.bf16 %v260_v14, %v260_v14 }
 0x113   :  { %v275_v15 = vpack.c.bf16 %v261_v13, %v261_v13 }
 0x115   :  { %458 = vmatprep.mubr.bf16.mxu1 %v275_v15 }
 0x118   :  { %459 = vmatmul.mubr.bf16.gmra.mrb[20].mxu1 %v274_v16 }
 0x1bb   :  { %v802_v17 = vpop.f32.mrb[28].mxu0 }
 0x1bc   :  { %v803_v46 = vpop.f32.mrb[29].mxu0 }
 0x1bd   :  { %v804_v19 = vadd.f32 %v803_v46, %v802_v17  ;;  %v805_v20 = vpop.f32.mrb[30].mxu0 }
 0x1be   :  { %v806_v47 = vpop.f32.mrb[31].mxu0 }
 0x1bf   :  { %v1119_v21 = vadd.f32 %v804_v19, %v1116_v18  ;;  %v807_v22 = vadd.f32 %v806_v47, %v805_v20 }
 0x1c1   :  { %v479_v23 = vmin.f32 %v1119_v21, 20.0  ;;  %v1123_v24 = vadd.f32 %v807_v22, %v1116_v18  ;;  %vm466_vm3 = vcmp.gt.f32.partialorder %v1119_v21, 20.0 }
 0x1c3   :  { %v492_v25 = vmul.f32 1.442695, %v479_v23  ;;  %v480_v26 = vmin.f32 %v1123_v24, 20.0  ;;  %v808_v27 = vpop.f32.mrb[0].mxu1  ;;  %vm467_vm4 = vcmp.gt.f32.partialorder %v1123_v24, 20.0 }
 0x1c4   :  { %v809_v28 = vpop.f32.mrb[1].mxu1 }
 0x1c5   :  { %883 = vpow2.f32 %v492_v25  ;;  %v494_v29 = vmul.f32 1.442695, %v480_v26  ;;  %v810_v30 = vadd.f32 %v809_v28, %v808_v27  ;;  %v811_v31 = vpop.f32.mrb[2].mxu1 }
 0x1c6   :  { %v812_v32 = vpop.f32.mrb[3].mxu1 }
 0x1c7   :  { %885 = vpow2.f32 %v494_v29  ;;  %v1127_v33 = vadd.f32 %v810_v30, %v1116_v18  ;;  %v813_v34 = vadd.f32 %v812_v32, %v811_v31 }
 0x1c9   :  { %v481_v35 = vmin.f32 %v1127_v33, 20.0  ;;  %v1131_v36 = vadd.f32 %v813_v34, %v1116_v18  ;;  %vm468_vm7 = vcmp.gt.f32.partialorder %v1127_v33, 20.0 }
 0x1cb   :  { %v496_v37 = vmul.f32 1.442695, %v481_v35  ;;  %v482_v38 = vmin.f32 %v1131_v36, 20.0  ;;  %v814_v39 = vpop.f32.mrb[4].mxu1  ;;  %vm469_vm10 = vcmp.gt.f32.partialorder %v1131_v36, 20.0 }
 0x1cc   :  { %v815_v40 = vpop.f32.mrb[5].mxu1 }
 0x1cd   :  { %887 = vpow2.f32 %v496_v37  ;;  %v498_v42 = vmul.f32 1.442695, %v482_v38  ;;  %v816_v43 = vadd.f32 %v815_v40, %v814_v39  ;;  %v817_v44 = vpop.f32.mrb[6].mxu1 }
 0x1ce   :  { %v818_v45 = vpop.f32.mrb[7].mxu1 }
 0x1cf   :  { %v884_v48 = vpop.eup %883  ;;  %889 = vpow2.f32 %v498_v42  ;;  %v1135_v49 = vadd.f32 %v816_v43, %v1116_v18  ;;  %v819_v50 = vadd.f32 %v818_v45, %v817_v44 }
 0x1d0   :  { %v518_v51 = vadd.f32 1.0, %v884_v48  ;;  %v521_v60 = vmul.f32 -0.5, %v884_v48  ;;  %v524_v4 = vand.u32 2147483647, %v884_v48 }
 0x1d1   :  { %v886_v52 = vpop.eup %885  ;;  %v483_v53 = vmin.f32 %v1135_v49, 20.0  ;;  %v1139_v54 = vadd.f32 %v819_v50, %v1116_v18  ;;  %vm470_vm12 = vcmp.gt.f32.partialorder %v1135_v49, 20.0 }
 0x1d2   :  { %891 = vlog2.f32 %v518_v51  ;;  %v527_v55 = vadd.f32 1.0, %v886_v52  ;;  %v530_v62 = vmul.f32 -0.5, %v886_v52  ;;  %v522_v6 = vadd.f32 1.0, %v521_v60 }
 0x1d3   :  { %v500_v56 = vmul.f32 1.442695, %v483_v53  ;;  %v484_v58 = vmin.f32 %v1139_v54, 20.0  ;;  %v820_v59 = vpop.f32.mrb[8].mxu1  ;;  %v533_v7 = vand.u32 2147483647, %v886_v52 }
 0x1d4   :  { %893 = vlog2.f32 %v527_v55  ;;  %v821_v61 = vpop.f32.mrb[9].mxu1  ;;  %v531_v10 = vadd.f32 1.0, %v530_v62  ;;  %vm1159_vm5 = vcmp.lt.f32.partialorder %v524_v4, 0.0004427343  ;;  %v523_v47 = vmul.f32 %v884_v48, %v522_v6 }
 0x1d5   :  { %895 = vpow2.f32 %v500_v56  ;;  %v502_v63 = vmul.f32 1.442695, %v484_v58  ;;  %v822_v0 = vadd.f32 %v821_v61, %v820_v59  ;;  %v823_v1 = vpop.f32.mrb[10].mxu1  ;;  %vm1167_vm6 = vcmp.lt.f32.partialorder %v533_v7, 0.0004427343 }
 0x1d6   :  { %v824_v3 = vpop.f32.mrb[11].mxu1  ;;  %v532_v27 = vmul.f32 %v886_v52, %v531_v10  ;;  %vm471_vm13 = vcmp.gt.f32.partialorder %v1139_v54, 20.0 }
 0x1d7   :  { %v1145_v2 = vpop.eup %887  ;;  %897 = vpow2.f32 %v502_v63  ;;  %v1152_v8 = vadd.f32 %v822_v0, %v1116_v18  ;;  %v825_v9 = vadd.f32 %v824_v3, %v823_v1 }
 0x1d8   :  { %v536_v41 = vadd.f32 1.0, %v1145_v2  ;;  %v539_v12 = vmul.f32 -0.5, %v1145_v2  ;;  %v542_v28 = vand.u32 2147483647, %v1145_v2 }
 0x1d9   :  { %v1149_v5 = vpop.eup %889  ;;  %v485_v13 = vmin.f32 %v1152_v8, 20.0  ;;  %v1165_v46 = vadd.f32 %v825_v9, %v1116_v18  ;;  %vm472_vm0 = vcmp.gt.f32.partialorder %v1152_v8, 20.0 }
 0x1da   :  { %899 = vlog2.f32 %v536_v41  ;;  %v545_v11 = vadd.f32 1.0, %v1149_v5  ;;  %v548_v17 = vmul.f32 -0.5, %v1149_v5  ;;  %v540_v37 = vadd.f32 1.0, %v539_v12 }
 0x1db   :  { %v826_v14 = vpop.f32.mrb[12].mxu1  ;;  %v504_v29 = vmul.f32 1.442695, %v485_v13  ;;  %v486_v30 = vmin.f32 %v1165_v46, 20.0  ;;  %v551_v38 = vand.u32 2147483647, %v1149_v5 }
 0x1dc   :  { %v892_v15 = vpop.eup %891  ;;  %901 = vlog2.f32 %v545_v11  ;;  %v827_v19 = vpop.f32.mrb[13].mxu1  ;;  %v549_v40 = vadd.f32 1.0, %v548_v17  ;;  %v541_v60 = vmul.f32 %v1145_v2, %v540_v37  ;;  %vm1206_vm8 = vcmp.lt.f32.partialorder %v542_v28, 0.0004427343 }
 0x1dd   :  { %v520_v20 = vmul.f32 0.6931472, %v892_v15  ;;  %v828_v23 = vadd.f32 %v827_v19, %v826_v14  ;;  %v829_v25 = vpop.f32.mrb[14].mxu1  ;;  %903 = vpow2.f32 %v504_v29  ;;  %v506_v48 = vmul.f32 1.442695, %v486_v30 }
 0x1de   :  { %v894_v26 = vpop.eup %893  ;;  %v830_v31 = vpop.f32.mrb[15].mxu1  ;;  %v550_v63 = vmul.f32 %v1149_v5, %v549_v40  ;;  %vm1211_vm9 = vcmp.lt.f32.partialorder %v551_v38, 0.0004427343 }
 0x1df   :  { %v1173_v32 = vpop.eup %895  ;;  %v526_v34 = vsel %vm1159_vm5, %v523_v47, %v520_v20  ;;  %v529_v35 = vmul.f32 0.6931472, %v894_v26  ;;  %v1183_v43 = vadd.f32 %v828_v23, %v1116_v18  ;;  %v831_v41 = vadd.f32 %v830_v31, %v829_v25 }
 0x1e0   :  { %v635_v39 = vsel %vm466_vm3, %v1119_v21, %v526_v34  ;;  %v554_v42 = vadd.f32 1.0, %v1173_v32  ;;  %v557_v53 = vmul.f32 -0.5, %v1173_v32  ;;  %v560_v47 = vand.u32 2147483647, %v1173_v32 }
 0x1e1   :  { %v648_v44 = vsel %vm61_vm1, %v635_v39, %v1119_v21  ;;  %v535_v45 = vsel %vm1167_vm6, %v532_v27, %v529_v35  ;;  %v1190_v50 = vpop.eup %897  ;;  %v487_v4 = vmin.f32 %v1183_v43, 20.0  ;;  %v1227_v14 = vadd.f32 %v831_v41, %v1116_v18 }
 0x1e2   :  { %v773_v51 = vpack.c.bf16 %v648_v44, %v648_v44  ;;  %v636_v52 = vsel %vm467_vm4, %v1123_v24, %v535_v45  ;;  %905 = vlog2.f32 %v554_v42  ;;  %v563_v21 = vadd.f32 1.0, %v1190_v50 }
 0x1e3   :  { %v649_v55 = vsel %vm61_vm1, %v636_v52, %v1123_v24  ;;  %v832_v56 = vpop.f32.mrb[16].mxu1  ;;  %907 = vpow2.f32 %v506_v48  ;;  %v558_v2 = vadd.f32 1.0, %v557_v53  ;;  %v566_v10 = vmul.f32 -0.5, %v1190_v50 }
 0x1e4   :  { %v900_v58 = vpop.eup %899  ;;  %715 = vst.msk [vmem:[%s1356_s5] sm:$0xf] %vm714_vm2, %v773_v51  ;;  %v774_v59 = vpack.c.bf16 %v649_v55, %v649_v55  ;;  %v833_v24 = vpop.f32.mrb[17].mxu1  ;;  %909 = vlog2.f32 %v563_v21  ;;  %v508_v13 = vmul.f32 1.442695, %v487_v4  ;;  %v488_v25 = vmin.f32 %v1227_v14, 20.0 }
 0x1e5   :  { %v538_v62 = vmul.f32 0.6931472, %v900_v58  ;;  %v835_v1 = vpop.f32.mrb[18].mxu1  ;;  %v834_v6 = vadd.f32 %v833_v24, %v832_v56  ;;  %v559_v29 = vmul.f32 %v1173_v32, %v558_v2  ;;  %v567_v30 = vadd.f32 1.0, %v566_v10 }
 0x1e6   :  { %v902_v3 = vpop.eup %901  ;;  %716 = vst.msk [vmem:[%s1356_s5 + $0x4] sm:$0xf] %vm714_vm2, %v774_v59  ;;  %v836_v7 = vpop.f32.mrb[19].mxu1  ;;  %911 = vpow2.f32 %v508_v13  ;;  %v510_v37 = vmul.f32 1.442695, %v488_v25  ;;  %vm473_vm3 = vcmp.gt.f32.partialorder %v1165_v46, 20.0 }
 0x1e7   :  { %v544_v5 = vsel %vm1206_vm8, %v541_v60, %v538_v62  ;;  %v547_v9 = vmul.f32 0.6931472, %v902_v3  ;;  %v837_v11 = vadd.f32 %v836_v7, %v835_v1  ;;  %v1230_v15 = vadd.f32 %v834_v6, %v1116_v18  ;;  %v1240_v22 = vpop.eup %903 }
 0x1e8   :  { %v637_v12 = vsel %vm468_vm7, %v1127_v33, %v544_v5  ;;  %v572_v31 = vadd.f32 1.0, %v1240_v22  ;;  %vm561_vm11 = vcmp.lt.f32.partialorder %v560_v47, 0.0004427343  ;;  %v568_v55 = vmul.f32 %v1190_v50, %v567_v30 }
 0x1e9   :  { %v650_v16 = vsel %vm61_vm1, %v637_v12, %v1127_v33  ;;  %v553_v17 = vsel %vm1211_vm9, %v550_v63, %v547_v9  ;;  %v489_v33 = vmin.f32 %v1230_v15, 20.0  ;;  %v1259_v32 = vadd.f32 %v837_v11, %v1116_v18 }
 0x1ea   :  { %v775_v19 = vpack.c.bf16 %v650_v16, %v650_v16  ;;  %v638_v20 = vsel %vm469_vm10, %v1131_v36, %v553_v17  ;;  %913 = vlog2.f32 %v572_v31  ;;  %v575_v56 = vmul.f32 -0.5, %v1240_v22 }
 0x1eb   :  { %v651_v23 = vsel %vm61_vm1, %v638_v20, %v1131_v36  ;;  %v838_v26 = vpop.f32.mrb[20].mxu1  ;;  %v569_v36 = vand.u32 2147483647, %v1190_v50  ;;  %v512_v40 = vmul.f32 1.442695, %v489_v33  ;;  %915 = vpow2.f32 %v510_v37 }
 0x1ec   :  { %v906_v27 = vpop.eup %905  ;;  %717 = vst.msk [vmem:[%s1356_s5 + $0x8] sm:$0xf] %vm714_vm2, %v775_v19  ;;  %v776_v28 = vpack.c.bf16 %v651_v23, %v651_v23  ;;  %v839_v34 = vpop.f32.mrb[21].mxu1  ;;  %v490_v60 = vmin.f32 %v1259_v32, 20.0  ;;  %v576_v1 = vadd.f32 1.0, %v575_v56  ;;  %vm474_vm6 = vcmp.gt.f32.partialorder %v1183_v43, 20.0 }
 0x1ed   :  { %v556_v35 = vmul.f32 0.6931472, %v906_v27  ;;  %v840_v38 = vadd.f32 %v839_v34, %v838_v26  ;;  %v908_v39 = vpop.eup %907  ;;  %v841_v42 = vpop.f32.mrb[22].mxu1  ;;  %vm570_vm14 = vcmp.lt.f32.partialorder %v569_v36, 0.0004427343  ;;  %vm475_vm8 = vcmp.gt.f32.partialorder %v1227_v14, 20.0 }
 0x1ee   :  { %718 = vst.msk [vmem:[%s1356_s5 + $0xc] sm:$0xf] %vm714_vm2, %v776_v28  ;;  %v910_v44 = vpop.eup %909  ;;  %v581_v48 = vadd.f32 1.0, %v908_v39  ;;  %v842_v51 = vpop.f32.mrb[23].mxu1  ;;  %v584_v62 = vmul.f32 -0.5, %v908_v39  ;;  %v577_v7 = vmul.f32 %v1240_v22, %v576_v1  ;;  %vm476_vm10 = vcmp.gt.f32.partialorder %v1230_v15, 20.0 }
 0x1ef   :  { %v562_v45 = vsel %vm561_vm11, %v559_v29, %v556_v35  ;;  %v565_v53 = vmul.f32 0.6931472, %v910_v44  ;;  %v1272_v24 = vadd.f32 %v840_v38, %v1116_v18  ;;  %v514_v63 = vmul.f32 1.442695, %v490_v60 }
 0x1f0   :  { %v639_v52 = vsel %vm470_vm12, %v1135_v49, %v562_v45  ;;  %917 = vlog2.f32 %v581_v48  ;;  %v912_v50 = vpop.eup %911  ;;  %v578_v2 = vand.u32 2147483647, %v1240_v22  ;;  %v585_v41 = vadd.f32 1.0, %v584_v62 }
 0x1f1   :  { %v652_v21 = vsel %vm61_vm1, %v639_v52, %v1135_v49  ;;  %v571_v59 = vsel %vm570_vm14, %v568_v55, %v565_v53  ;;  %919 = vpow2.f32 %v512_v40  ;;  %v590_v3 = vadd.f32 1.0, %v912_v50 }
 0x1f2   :  { %v777_v58 = vpack.c.bf16 %v652_v21, %v652_v21  ;;  %v640_v61 = vsel %vm471_vm13, %v1139_v54, %v571_v59  ;;  %921 = vpow2.f32 %v514_v63  ;;  %v491_v18 = vmin.f32 %v1272_v24, 20.0 }
 0x1f3   :  { %v653_v49 = vsel %vm61_vm1, %v640_v61, %v1139_v54  ;;  %923 = vlog2.f32 %v590_v3  ;;  %v587_v5 = vand.u32 2147483647, %v908_v39  ;;  %vm579_vm15 = vcmp.lt.f32.partialorder %v578_v2, 0.0004427343 }
 0x1f4   :  { %719 = vst.msk [vmem:[%s1356_s5 + $0x10] sm:$0xf] %vm714_vm2, %v777_v58  ;;  %v778_v0 = vpack.c.bf16 %v653_v49, %v653_v49  ;;  %v914_v4 = vpop.eup %913  ;;  %v516_v6 = vmul.f32 1.442695, %v491_v18  ;;  %v593_v10 = vmul.f32 -0.5, %v912_v50  ;;  %v586_v20 = vmul.f32 %v908_v39, %v585_v41 }
 0x1f5   :  { %v574_v54 = vmul.f32 0.6931472, %v914_v4  ;;  %v916_v9 = vpop.eup %915  ;;  %vm588_vm4 = vcmp.lt.f32.partialorder %v587_v5, 0.0004427343  ;;  %v596_v27 = vand.u32 2147483647, %v912_v50 }
 0x1f6   :  { %720 = vst.msk [vmem:[%s1356_s5 + $0x14] sm:$0xf] %vm714_vm2, %v778_v0  ;;  %925 = vpow2.f32 %v516_v6  ;;  %v599_v13 = vadd.f32 1.0, %v916_v9  ;;  %v594_v25 = vadd.f32 1.0, %v593_v10  ;;  %v602_v29 = vmul.f32 -0.5, %v916_v9 }
 0x1f7   :  { %v580_v12 = vsel %vm579_vm15, %v577_v7, %v574_v54  ;;  %vm597_vm5 = vcmp.lt.f32.partialorder %v596_v27, 0.0004427343  ;;  %v605_v42 = vand.u32 2147483647, %v916_v9  ;;  %vm477_vm12 = vcmp.gt.f32.partialorder %v1259_v32, 20.0 }
 0x1f8   :  { %v641_v17 = vsel %vm472_vm0, %v1152_v8, %v580_v12  ;;  %927 = vlog2.f32 %v599_v13  ;;  %v595_v36 = vmul.f32 %v912_v50, %v594_v25  ;;  %vm478_vm14 = vcmp.gt.f32.partialorder %v1272_v24, 20.0 }
 0x1f9   :  { %v654_v47 = vsel %vm61_vm1, %v641_v17, %v1152_v8  ;;  %vm606_vm7 = vcmp.lt.f32.partialorder %v605_v42, 0.0004427343 }
 0x1fa   :  { %v918_v11 = vpop.eup %917  ;;  %v779_v22 = vpack.c.bf16 %v654_v47, %v654_v47 }
 0x1fb   :  { %v920_v16 = vpop.eup %919  ;;  %v583_v19 = vmul.f32 0.6931472, %v918_v11 }
 0x1fc   :  { %v608_v33 = vadd.f32 1.0, %v920_v16  ;;  %v922_v28 = vpop.eup %921  ;;  %721 = vst.msk [vmem:[%s1356_s5 + $0x18] sm:$0xf] %vm714_vm2, %v779_v22  ;;  %v611_v37 = vmul.f32 -0.5, %v920_v16  ;;  %v614_v56 = vand.u32 2147483647, %v920_v16 }
 0x1fd   :  { %v589_v23 = vsel %vm588_vm4, %v586_v20, %v583_v19  ;;  %v924_v30 = vpop.eup %923  ;;  %v617_v34 = vadd.f32 1.0, %v922_v28  ;;  %v620_v48 = vmul.f32 -0.5, %v922_v28  ;;  %v623_v62 = vand.u32 2147483647, %v922_v28 }
 0x1fe   :  { %v642_v26 = vsel %vm473_vm3, %v1165_v46, %v589_v23  ;;  %929 = vlog2.f32 %v608_v33  ;;  %v592_v35 = vmul.f32 0.6931472, %v924_v30  ;;  %v612_v53 = vadd.f32 1.0, %v611_v37 }
 0x1ff   :  { %v655_v8 = vsel %vm61_vm1, %v642_v26, %v1165_v46  ;;  %931 = vlog2.f32 %v617_v34  ;;  %v603_v46 = vadd.f32 1.0, %v602_v29  ;;  %v621_v60 = vadd.f32 1.0, %v620_v48 }
 0x200   :  { %v780_v31 = vpack.c.bf16 %v655_v8, %v655_v8  ;;  %v926_v38 = vpop.eup %925  ;;  %v598_v39 = vsel %vm597_vm5, %v595_v36, %v592_v35  ;;  %v613_v49 = vmul.f32 %v920_v16, %v612_v53  ;;  %vm615_vm9 = vcmp.lt.f32.partialorder %v614_v56, 0.0004427343 }
 0x201   :  { %v643_v40 = vsel %vm474_vm6, %v1183_v43, %v598_v39  ;;  %v626_v44 = vadd.f32 1.0, %v926_v38  ;;  %v604_v21 = vmul.f32 %v916_v9, %v603_v46  ;;  %v622_v4 = vmul.f32 %v922_v28, %v621_v60 }
 0x202   :  { %722 = vst.msk [vmem:[%s1356_s5 + $0x1c] sm:$0xf] %vm714_vm2, %v780_v31  ;;  %v656_v45 = vsel %vm61_vm1, %v643_v40, %v1183_v43  ;;  %v928_v51 = vpop.eup %927  ;;  %v629_v43 = vmul.f32 -0.5, %v926_v38  ;;  %vm624_vm11 = vcmp.lt.f32.partialorder %v623_v62, 0.0004427343 }
 0x203   :  { %v781_v52 = vpack.c.bf16 %v656_v45, %v656_v45  ;;  %933 = vlog2.f32 %v626_v44  ;;  %v601_v55 = vmul.f32 0.6931472, %v928_v51  ;;  %v632_v6 = vand.u32 2147483647, %v926_v38 }
 0x204   :  { %v630_v41 = vadd.f32 1.0, %v629_v43 }
 0x205   :  { %723 = vst.msk [vmem:[%s1356_s5 + $0x20] sm:$0xf] %vm714_vm2, %v781_v52  ;;  %v607_v59 = vsel %vm606_vm7, %v604_v21, %v601_v55  ;;  %vm633_vm13 = vcmp.lt.f32.partialorder %v632_v6, 0.0004427343 }
 0x206   :  { %v644_v61 = vsel %vm475_vm8, %v1227_v14, %v607_v59 }
 0x207   :  { %v657_v63 = vsel %vm61_vm1, %v644_v61, %v1227_v14 }
 0x208   :  { %v930_v58 = vpop.eup %929  ;;  %v782_v1 = vpack.c.bf16 %v657_v63, %v657_v63 }
 0x209   :  { %v610_v50 = vmul.f32 0.6931472, %v930_v58  ;;  %v932_v0 = vpop.eup %931 }
 0x20a   :  { %v619_v18 = vmul.f32 0.6931472, %v932_v0  ;;  %724 = vst.msk [vmem:[%s1356_s5 + $0x24] sm:$0xf] %vm714_vm2, %v782_v1 }
 0x20b   :  { %v616_v3 = vsel %vm615_vm9, %v613_v49, %v610_v50 }
 0x20c   :  { %v645_v2 = vsel %vm476_vm10, %v1230_v15, %v616_v3  ;;  %v625_v7 = vsel %vm624_vm11, %v622_v4, %v619_v18 }
 0x20d   :  { %v658_v14 = vsel %vm61_vm1, %v645_v2, %v1230_v15  ;;  %v934_v5 = vpop.eup %933  ;;  %v646_v9 = vsel %vm477_vm12, %v1259_v32, %v625_v7  ;;  %v631_v15 = vmul.f32 %v926_v38, %v630_v41 }
 0x20e   :  { %v783_v54 = vpack.c.bf16 %v658_v14, %v658_v14  ;;  %v659_v10 = vsel %vm61_vm1, %v646_v9, %v1259_v32  ;;  %v628_v11 = vmul.f32 0.6931472, %v934_v5 }
 0x20f   :  { %v784_v12 = vpack.c.bf16 %v659_v10, %v659_v10 }
 0x210   :  { %725 = vst.msk [vmem:[%s1356_s5 + $0x28] sm:$0xf] %vm714_vm2, %v783_v54  ;;  %v634_v13 = vsel %vm633_vm13, %v631_v15, %v628_v11 }
 0x211   :  { %726 = vst.msk [vmem:[%s1356_s5 + $0x2c] sm:$0xf] %vm714_vm2, %v784_v12  ;;  %v647_v16 = vsel %vm478_vm14, %v1272_v24, %v634_v13 }
 0x212   :  { %v660_v17 = vsel %vm61_vm1, %v647_v16, %v1272_v24 }
 0x213   :  { %v785_v19 = vpack.c.bf16 %v660_v17, %v660_v17 }
 0x215   :  { %727 = vst.msk [vmem:[%s1356_s5 + $0x30] sm:$0xf] %vm714_vm2, %v785_v19 }

</bundles_post_ra>
